<compile_context>
chip_gen: v6e
topology: v6e:2x2x1
jax: 0.10.0
libtpu: 0.0.40
codegen_flags: <defaults>
</compile_context>

<pallas_src>
import jax
import jax.numpy as jnp
from jax.experimental import pallas as pl
from jax.experimental.pallas import tpu as pltpu


# ----------------------------------------------------------------------------
# Kernels
# ----------------------------------------------------------------------------
def _conv_down_kernel(x_ref, halo_ref, w01_ref, w2_ref, b_ref, o_ref):
    """Stride-2 3x3 conv over a tile of output rows.

    x_ref   : (th, 2, Wo+1, 2C)  row-pairs of the padded NHWC input; pair r
              holds padded rows (2r, 2r+1), width packed as (col-pair, 2C).
    halo_ref: (1, 2, Wo+1, 2C)   row-pair just below the tile (supplies padded
              row 2*(r0+th) needed by the kh=2 tap of the last output row).
    w01_ref : (3, 2C, C)  fused kw=0 / kw=1 weights per kh (Cin stacked).
    w2_ref  : (3, C, C)   kw=2 weights per kh.
    b_ref   : (1, C)
    o_ref   : (th, Wo, C)
    """
    th, wo, c = o_ref.shape
    m = th * wo
    f32 = jnp.float32

    x = x_ref[...]                                   # (th, 2, Wo+1, 2C)
    halo = halo_ref[...]                             # (1, 2, Wo+1, 2C)
    p0 = x[:, 0]                                     # padded rows 2r
    p1 = x[:, 1]                                     # padded rows 2r+1
    if th == 1:
        p2 = halo[:, 0]                              # padded rows 2r+2
    else:
        p2 = jnp.concatenate([x[1:, 0], halo[:, 0]], axis=0)

    def tap_pair(plane, kh):
        # kw=0,1 fused: contiguous (th, Wo, 2C) slice against (2C, C).
        a = jnp.dot(plane[:, :wo, :].reshape(m, 2 * c), w01_ref[kh],
                    preferred_element_type=f32)
        # kw=2: next column-pair, first half.
        b = jnp.dot(plane[:, 1:, :c].reshape(m, c), w2_ref[kh],
                    preferred_element_type=f32)
        return a + b

    acc = tap_pair(p0, 0)
    acc = acc + tap_pair(p1, 1)
    acc = acc + tap_pair(p2, 2)
    acc = acc + b_ref[...].astype(f32)               # bias added once
    o_ref[...] = acc.reshape(th, wo, c).astype(o_ref.dtype)


def _avgpool_kernel(x_ref, o_ref):
    # x_ref: (th, 2, Wo, 2*C)   o_ref: (th, Wo, C)
    c = o_ref.shape[-1]
    x = x_ref[...].astype(jnp.float32)
    s = x[:, 0, :, :c] + x[:, 0, :, c:] + x[:, 1, :, :c] + x[:, 1, :, c:]
    o_ref[...] = (s * 0.25).astype(o_ref.dtype)


# ----------------------------------------------------------------------------
# Tiling / VMEM helpers
# ----------------------------------------------------------------------------
def _rup(n, m):
    return (n + m - 1) // m * m


def _sublanes(itemsize):
    return {4: 8, 2: 16, 1: 32}.get(int(itemsize), 8)


def _tile_bytes(shape, itemsize):
    """Bytes of one VMEM buffer for `shape` incl. (sublane, 128-lane) padding."""
    s = [max(int(d), 1) for d in shape]
    if len(s) >= 1:
        s[-1] = _rup(s[-1], 128)
    if len(s) >= 2:
        s[-2] = _rup(s[-2], _sublanes(itemsize))
    n = 1
    for d in s:
        n *= d
    return n * int(itemsize)


def _vmem_budget_limit():
    """(tile budget, vmem_limit_bytes) derived from the actual chip's VMEM."""
    cap = None
    try:
        cap = getattr(pltpu.get_tpu_info(), "vmem_capacity_bytes", None)
    except Exception:
        cap = None
    if not cap:
        cap = 64 * 1024 * 1024           # be safe: assume the smallest (v7x)
    limit = max(16 << 20, min(int(cap * 0.85), int(cap) - (8 << 20)))
    return int(limit * 0.6), int(limit)


def _pick_tile_rows(Ho, B, per_row_bytes, fixed_bytes, budget):
    avail = max(budget - fixed_bytes, per_row_bytes)
    th = max(1, min(Ho, avail // max(per_row_bytes, 1)))
    if B == 1 and Ho > 1:                # keep >= 2 grid steps (v7x megacore)
        th = min(th, -(-Ho // 2))
    return int(th)


# ----------------------------------------------------------------------------
# with_conv=True path
# ----------------------------------------------------------------------------
def downsample_conv_nhwc(x, weight, bias, operand_dtype=None):
    """x: (B,H,W,C) NHWC, weight: (C,C,3,3) torch OIHW, bias: (C,)."""
    B, H, W, C = x.shape
    assert H % 2 == 0 and W % 2 == 0, "even spatial dims expected"
    Ho, Wo = H // 2, W // 2
    cdt = jnp.dtype(operand_dtype) if operand_dtype is not None else x.dtype

    # Asymmetric bottom/right zero pad.  Pad by 2 so the (row-pair, col-pair)
    # repacking stays rectangular; the extra row/col is never read by a valid
    # output, so this matches F.pad(x, (0,1,0,1)) exactly.
    xp = jnp.pad(x.astype(cdt), ((0, 0), (0, 2), (0, 2), (0, 0)))
    xr = xp.reshape(B, Ho + 1, 2, Wo + 1, 2 * C)          # free reshape

    # OIHW -> (kh, kw, Cin, Cout); fuse kw=0,1 along Cin.
    w_hwio = jnp.transpose(weight, (2, 3, 1, 0)).astype(cdt)   # (3,3,Cin,Cout)
    w01 = w_hwio[:, 0:2].reshape(3, 2 * C, C)                  # (3, 2C, C)
    w2 = w_hwio[:, 2]                                          # (3, C, C)
    b2d = bias.reshape(1, C)

    isz = jnp.dtype(cdt).itemsize
    osz = x.dtype.itemsize
    budget, vmem_limit = _vmem_budget_limit()
    row_in = _tile_bytes((1, 2, Wo + 1, 2 * C), isz)      # one xr row-pair
    per_row = 2 * row_in + 2 * _tile_bytes((1, Wo, C), osz)    # double-buffered
    fixed = (2 * row_in                                    # halo block
             + 2 * _tile_bytes((3, 2 * C, C), isz)
             + 2 * _tile_bytes((3, C, C), isz)
             + 2 * _tile_bytes((1, C), bias.dtype.itemsize)
             + (2 << 20))                                  # compiler slack
    th = _pick_tile_rows(Ho, B, per_row, fixed, budget)
    grid = (B, pl.cdiv(Ho, th))

    main_spec = pl.BlockSpec((None, th, 2, Wo + 1, 2 * C),
                             lambda b, i: (b, i, 0, 0, 0))
    # Block size 1 on the row-pair axis => block index == element index.
    halo_spec = pl.BlockSpec((None, 1, 2, Wo + 1, 2 * C),
                             lambda b, i: (b, jnp.minimum(i * th + th, Ho),
                                           0, 0, 0))

    flops = 2 * B * Ho * Wo * 9 * C * C
    bytes_accessed = (B * (Ho + 1) * 2 * (Wo + 1) * 2 * C * isz
                      + 9 * C * C * isz + B * Ho * Wo * C * osz)

    out = pl.pallas_call(
        _conv_down_kernel,
        out_shape=jax.ShapeDtypeStruct((B, Ho, Wo, C), x.dtype),
        grid=grid,
        in_specs=[main_spec, halo_spec,
                  pl.BlockSpec((3, 2 * C, C), lambda b, i: (0, 0, 0)),  # resident
                  pl.BlockSpec((3, C, C), lambda b, i: (0, 0, 0)),      # resident
                  pl.BlockSpec((1, C), lambda b, i: (0, 0))],           # resident
        out_specs=pl.BlockSpec((None, th, Wo, C), lambda b, i: (b, i, 0, 0)),
        compiler_params=pltpu.CompilerParams(
            dimension_semantics=("parallel", "parallel"),
            vmem_limit_bytes=vmem_limit),
        cost_estimate=pl.CostEstimate(flops=flops, transcendentals=0,
                                      bytes_accessed=bytes_accessed),
    )(xr, xr, w01, w2, b2d)
    return out


def downsample_conv(x_nchw, weight, bias):
    """Torch-compatible NCHW wrapper for the with_conv=True path."""
    x = jnp.transpose(x_nchw, (0, 2, 3, 1))
    out = downsample_conv_nhwc(x, weight, bias)
    return jnp.transpose(out, (0, 3, 1, 2))


# ----------------------------------------------------------------------------
# with_conv=False path (avg_pool2d, k=2, s=2)
# ----------------------------------------------------------------------------
def downsample_avgpool_nhwc(x):
    B, H, W, C = x.shape
    assert H % 2 == 0 and W % 2 == 0, "even spatial dims expected"
    Ho, Wo = H // 2, W // 2
    isz = x.dtype.itemsize

    # Free reshape: (B,H,W,C) -> (B,Ho,2,Wo,2C); both 2x2 window elements end
    # up as contiguous lane/sublane-dense slices of the tile.
    xr = x.reshape(B, Ho, 2, Wo, 2 * C)

    budget, vmem_limit = _vmem_budget_limit()
    per_row = (2 * _tile_bytes((1, 2, Wo, 2 * C), isz)
               + 2 * _tile_bytes((1, Wo, C), isz))
    th = _pick_tile_rows(Ho, B, per_row, 1 << 20, budget)
    grid = (B, pl.cdiv(Ho, th))

    out = pl.pallas_call(
        _avgpool_kernel,
        out_shape=jax.ShapeDtypeStruct((B, Ho, Wo, C), x.dtype),
        grid=grid,
        in_specs=[pl.BlockSpec((None, th, 2, Wo, 2 * C),
                               lambda b, i: (b, i, 0, 0, 0))],
        out_specs=pl.BlockSpec((None, th, Wo, C), lambda b, i: (b, i, 0, 0)),
        compiler_params=pltpu.CompilerParams(
            dimension_semantics=("parallel", "parallel"),
            vmem_limit_bytes=vmem_limit),
        cost_estimate=pl.CostEstimate(
            flops=4 * B * Ho * Wo * C, transcendentals=0,
            bytes_accessed=B * H * W * C * isz + B * Ho * Wo * C * isz),
    )(xr)
    return out


def downsample_avgpool(x_nchw):
    """Torch-compatible NCHW wrapper for the with_conv=False path."""
    x = jnp.transpose(x_nchw, (0, 2, 3, 1))
    out = downsample_avgpool_nhwc(x)
    return jnp.transpose(out, (0, 3, 1, 2))


# ----------------------------------------------------------------------------
# Pure-JAX references (sanity check)
# ----------------------------------------------------------------------------
def _ref_conv(x_nchw, weight, bias):
    x = jnp.pad(x_nchw, ((0, 0), (0, 0), (0, 1), (0, 1)))
    y = jax.lax.conv_general_dilated(
        x, weight, window_strides=(2, 2), padding="VALID",
        dimension_numbers=("NCHW", "OIHW", "NCHW"))
    return y + bias.reshape(1, -1, 1, 1)


def _ref_avgpool(x_nchw):
    B, C, H, W = x_nchw.shape
    return x_nchw.reshape(B, C, H // 2, 2, W // 2, 2).mean(axis=(3, 5))


if __name__ == "__main__":
    key = jax.random.PRNGKey(0)
    kx, kw, kb = jax.random.split(key, 3)

    B, C, H, W = 2, 4, 16, 16
    x = jax.random.normal(kx, (B, C, H, W), dtype=jnp.float32)

    # Deterministic synthetic Conv2d(C, C, 3, stride=2) parameters.
    fan_in = C * 3 * 3
    bound = 1.0 / (fan_in ** 0.5)
    weight = jax.random.uniform(kw, (C, C, 3, 3), jnp.float32, -bound, bound)
    bias = jax.random.uniform(kb, (C,), jnp.float32, -bound, bound)

    # with_conv=True path
    y_conv = jax.block_until_ready(downsample_conv(x, weight, bias))
    y_conv_ref = _ref_conv(x, weight, bias)
    assert y_conv.shape == (B, C, H // 2, W // 2)
    assert jnp.allclose(y_conv, y_conv_ref, atol=1e-5, rtol=1e-5)

    # with_conv=False path
    y_pool = jax.block_until_ready(downsample_avgpool(x))
    y_pool_ref = _ref_avgpool(x)
    assert y_pool.shape == (B, C, H // 2, W // 2)
    assert jnp.allclose(y_pool, y_pool_ref, atol=1e-5, rtol=1e-5)

    print("KERNEL_OK")
</pallas_src>

<mosaic_0001>
module attributes {stable_mosaic.version = 11 : i64} {
  func.func @_conv_down_kernel(%arg0: i32, %arg1: i32, %arg2: memref<1x8x2x9x8xf32, #tpu.memory_space<vmem>>, %arg3: memref<1x1x2x9x8xf32, #tpu.memory_space<vmem>>, %arg4: memref<3x8x4xf32, #tpu.memory_space<vmem>>, %arg5: memref<3x4x4xf32, #tpu.memory_space<vmem>>, %arg6: memref<1x4xf32, #tpu.memory_space<vmem>>, %arg7: memref<1x8x8x4xf32, #tpu.memory_space<vmem>>) attributes {dimension_semantics = [#tpu.dimension_semantics<parallel>, #tpu.dimension_semantics<parallel>], iteration_bounds = array<i64: 2, 1>, scalar_prefetch = 0 : i64, scratch_operands = 0 : i64, tpu.core_type = #tpu.core_type<tc>, window_params = [{transform_indices = @transform_0, window_bounds = array<i64: 1, 8, 2, 9, 8>}, {transform_indices = @transform_1, window_bounds = array<i64: 1, 1, 2, 9, 8>}, {pipeline_mode = #tpu.pipeline_mode<synchronous>, transform_indices = @transform_2, window_bounds = array<i64: 3, 8, 4>}, {pipeline_mode = #tpu.pipeline_mode<synchronous>, transform_indices = @transform_3, window_bounds = array<i64: 3, 4, 4>}, {pipeline_mode = #tpu.pipeline_mode<synchronous>, transform_indices = @transform_4, window_bounds = array<i64: 1, 4>}, {transform_indices = @transform_5, window_bounds = array<i64: 1, 8, 8, 4>}]} {
    %c0 = arith.constant 0 : index
    %c0_0 = arith.constant 0 : index
    %c0_1 = arith.constant 0 : index
    %c0_2 = arith.constant 0 : index
    %c0_3 = arith.constant 0 : index
    %0 = vector.load %arg2[%c0, %c0_0, %c0_1, %c0_2, %c0_3] : memref<1x8x2x9x8xf32, #tpu.memory_space<vmem>>, vector<1x8x2x9x8xf32>
    %1 = vector.shape_cast %0 : vector<1x8x2x9x8xf32> to vector<8x2x9x8xf32>
    %c0_4 = arith.constant 0 : index
    %c0_5 = arith.constant 0 : index
    %c0_6 = arith.constant 0 : index
    %c0_7 = arith.constant 0 : index
    %c0_8 = arith.constant 0 : index
    %2 = vector.load %arg3[%c0_4, %c0_5, %c0_6, %c0_7, %c0_8] : memref<1x1x2x9x8xf32, #tpu.memory_space<vmem>>, vector<1x1x2x9x8xf32>
    %3 = vector.shape_cast %2 : vector<1x1x2x9x8xf32> to vector<1x2x9x8xf32>
    %4 = vector.extract_strided_slice %1 {offsets = [0, 0, 0, 0], sizes = [8, 1, 9, 8], strides = [1, 1, 1, 1]} : vector<8x2x9x8xf32> to vector<8x1x9x8xf32>
    %5 = vector.shape_cast %4 : vector<8x1x9x8xf32> to vector<8x9x8xf32>
    %6 = vector.extract_strided_slice %1 {offsets = [0, 1, 0, 0], sizes = [8, 1, 9, 8], strides = [1, 1, 1, 1]} : vector<8x2x9x8xf32> to vector<8x1x9x8xf32>
    %7 = vector.shape_cast %6 : vector<8x1x9x8xf32> to vector<8x9x8xf32>
    %8 = vector.extract_strided_slice %1 {offsets = [1, 0, 0, 0], sizes = [7, 1, 9, 8], strides = [1, 1, 1, 1]} : vector<8x2x9x8xf32> to vector<7x1x9x8xf32>
    %9 = vector.shape_cast %8 : vector<7x1x9x8xf32> to vector<7x9x8xf32>
    %10 = vector.extract_strided_slice %3 {offsets = [0, 0, 0, 0], sizes = [1, 1, 9, 8], strides = [1, 1, 1, 1]} : vector<1x2x9x8xf32> to vector<1x1x9x8xf32>
    %11 = vector.shape_cast %10 : vector<1x1x9x8xf32> to vector<1x9x8xf32>
    %12 = tpu.concatenate %9, %11 in 0 : vector<7x9x8xf32>, vector<1x9x8xf32> -> vector<8x9x8xf32>
    %13 = vector.extract_strided_slice %5 {offsets = [0, 0, 0], sizes = [8, 8, 8], strides = [1, 1, 1]} : vector<8x9x8xf32> to vector<8x8x8xf32>
    %14 = vector.shape_cast %13 : vector<8x8x8xf32> to vector<64x8xf32>
    %c0_9 = arith.constant 0 : index
    %c0_10 = arith.constant 0 : index
    %c0_11 = arith.constant 0 : index
    %15 = vector.load %arg4[%c0_9, %c0_10, %c0_11] : memref<3x8x4xf32, #tpu.memory_space<vmem>>, vector<1x8x4xf32>
    %16 = vector.shape_cast %15 : vector<1x8x4xf32> to vector<8x4xf32>
    %cst = arith.constant dense<0.000000e+00> : vector<64x4xf32>
    %17 = tpu.matmul %14, %16, %cst {dimension_numbers = #tpu.dot_dimension_numbers<[1], [0], [0], [1], [0, 0, 1, 1], [], []>} : vector<64x8xf32>, vector<8x4xf32>, vector<64x4xf32> -> vector<64x4xf32>
    %18 = vector.extract_strided_slice %5 {offsets = [0, 1, 0], sizes = [8, 8, 4], strides = [1, 1, 1]} : vector<8x9x8xf32> to vector<8x8x4xf32>
    %19 = vector.shape_cast %18 : vector<8x8x4xf32> to vector<64x4xf32>
    %c0_12 = arith.constant 0 : index
    %c0_13 = arith.constant 0 : index
    %c0_14 = arith.constant 0 : index
    %20 = vector.load %arg5[%c0_12, %c0_13, %c0_14] : memref<3x4x4xf32, #tpu.memory_space<vmem>>, vector<1x4x4xf32>
    %21 = vector.shape_cast %20 : vector<1x4x4xf32> to vector<4x4xf32>
    %cst_15 = arith.constant dense<0.000000e+00> : vector<64x4xf32>
    %22 = tpu.matmul %19, %21, %cst_15 {dimension_numbers = #tpu.dot_dimension_numbers<[1], [0], [0], [1], [0, 0, 1, 1], [], []>} : vector<64x4xf32>, vector<4x4xf32>, vector<64x4xf32> -> vector<64x4xf32>
    %23 = arith.addf %17, %22 : vector<64x4xf32>
    %24 = vector.extract_strided_slice %7 {offsets = [0, 0, 0], sizes = [8, 8, 8], strides = [1, 1, 1]} : vector<8x9x8xf32> to vector<8x8x8xf32>
    %25 = vector.shape_cast %24 : vector<8x8x8xf32> to vector<64x8xf32>
    %c1 = arith.constant 1 : index
    %c0_16 = arith.constant 0 : index
    %c0_17 = arith.constant 0 : index
    %26 = vector.load %arg4[%c1, %c0_16, %c0_17] : memref<3x8x4xf32, #tpu.memory_space<vmem>>, vector<1x8x4xf32>
    %27 = vector.shape_cast %26 : vector<1x8x4xf32> to vector<8x4xf32>
    %cst_18 = arith.constant dense<0.000000e+00> : vector<64x4xf32>
    %28 = tpu.matmul %25, %27, %cst_18 {dimension_numbers = #tpu.dot_dimension_numbers<[1], [0], [0], [1], [0, 0, 1, 1], [], []>} : vector<64x8xf32>, vector<8x4xf32>, vector<64x4xf32> -> vector<64x4xf32>
    %29 = vector.extract_strided_slice %7 {offsets = [0, 1, 0], sizes = [8, 8, 4], strides = [1, 1, 1]} : vector<8x9x8xf32> to vector<8x8x4xf32>
    %30 = vector.shape_cast %29 : vector<8x8x4xf32> to vector<64x4xf32>
    %c1_19 = arith.constant 1 : index
    %c0_20 = arith.constant 0 : index
    %c0_21 = arith.constant 0 : index
    %31 = vector.load %arg5[%c1_19, %c0_20, %c0_21] : memref<3x4x4xf32, #tpu.memory_space<vmem>>, vector<1x4x4xf32>
    %32 = vector.shape_cast %31 : vector<1x4x4xf32> to vector<4x4xf32>
    %cst_22 = arith.constant dense<0.000000e+00> : vector<64x4xf32>
    %33 = tpu.matmul %30, %32, %cst_22 {dimension_numbers = #tpu.dot_dimension_numbers<[1], [0], [0], [1], [0, 0, 1, 1], [], []>} : vector<64x4xf32>, vector<4x4xf32>, vector<64x4xf32> -> vector<64x4xf32>
    %34 = arith.addf %28, %33 : vector<64x4xf32>
    %35 = arith.addf %23, %34 : vector<64x4xf32>
    %36 = vector.extract_strided_slice %12 {offsets = [0, 0, 0], sizes = [8, 8, 8], strides = [1, 1, 1]} : vector<8x9x8xf32> to vector<8x8x8xf32>
    %37 = vector.shape_cast %36 : vector<8x8x8xf32> to vector<64x8xf32>
    %c2 = arith.constant 2 : index
    %c0_23 = arith.constant 0 : index
    %c0_24 = arith.constant 0 : index
    %38 = vector.load %arg4[%c2, %c0_23, %c0_24] : memref<3x8x4xf32, #tpu.memory_space<vmem>>, vector<1x8x4xf32>
    %39 = vector.shape_cast %38 : vector<1x8x4xf32> to vector<8x4xf32>
    %cst_25 = arith.constant dense<0.000000e+00> : vector<64x4xf32>
    %40 = tpu.matmul %37, %39, %cst_25 {dimension_numbers = #tpu.dot_dimension_numbers<[1], [0], [0], [1], [0, 0, 1, 1], [], []>} : vector<64x8xf32>, vector<8x4xf32>, vector<64x4xf32> -> vector<64x4xf32>
    %41 = vector.extract_strided_slice %12 {offsets = [0, 1, 0], sizes = [8, 8, 4], strides = [1, 1, 1]} : vector<8x9x8xf32> to vector<8x8x4xf32>
    %42 = vector.shape_cast %41 : vector<8x8x4xf32> to vector<64x4xf32>
    %c2_26 = arith.constant 2 : index
    %c0_27 = arith.constant 0 : index
    %c0_28 = arith.constant 0 : index
    %43 = vector.load %arg5[%c2_26, %c0_27, %c0_28] : memref<3x4x4xf32, #tpu.memory_space<vmem>>, vector<1x4x4xf32>
    %44 = vector.shape_cast %43 : vector<1x4x4xf32> to vector<4x4xf32>
    %cst_29 = arith.constant dense<0.000000e+00> : vector<64x4xf32>
    %45 = tpu.matmul %42, %44, %cst_29 {dimension_numbers = #tpu.dot_dimension_numbers<[1], [0], [0], [1], [0, 0, 1, 1], [], []>} : vector<64x4xf32>, vector<4x4xf32>, vector<64x4xf32> -> vector<64x4xf32>
    %46 = arith.addf %40, %45 : vector<64x4xf32>
    %47 = arith.addf %35, %46 : vector<64x4xf32>
    %c0_30 = arith.constant 0 : index
    %c0_31 = arith.constant 0 : index
    %48 = vector.load %arg6[%c0_30, %c0_31] : memref<1x4xf32, #tpu.memory_space<vmem>>, vector<1x4xf32>
    %49 = vector.broadcast %48 : vector<1x4xf32> to vector<64x4xf32>
    %50 = arith.addf %47, %49 : vector<64x4xf32>
    %51 = vector.shape_cast %50 : vector<64x4xf32> to vector<8x8x4xf32>
    %c0_32 = arith.constant 0 : index
    %c0_33 = arith.constant 0 : index
    %c0_34 = arith.constant 0 : index
    %c0_35 = arith.constant 0 : index
    %52 = vector.load %arg7[%c0_32, %c0_33, %c0_34, %c0_35] : memref<1x8x8x4xf32, #tpu.memory_space<vmem>>, vector<1x8x8x4xf32>
    %53 = vector.shape_cast %52 : vector<1x8x8x4xf32> to vector<8x8x4xf32>
    %54 = vector.shape_cast %51 : vector<8x8x4xf32> to vector<1x8x8x4xf32>
    tpu.vector_store %arg7[%c0_32, %c0_33, %c0_34, %c0_35], %54 {strides = array<i32>} : memref<1x8x8x4xf32, #tpu.memory_space<vmem>>, vector<1x8x8x4xf32>,
    return
  }
  func.func @transform_0(%arg0: i32, %arg1: i32) -> (i32, i32, i32, i32, i32) {
    %c0_i32 = arith.constant 0 : i32
    %c0_i32_0 = arith.constant 0 : i32
    %c0_i32_1 = arith.constant 0 : i32
    %c0_i32_2 = arith.constant 0 : i32
    return %arg0, %arg1, %c0_i32, %c0_i32_0, %c0_i32_1 : i32, i32, i32, i32, i32
  }
  func.func @transform_1(%arg0: i32, %arg1: i32) -> (i32, i32, i32, i32, i32) {
    %c8_i32 = arith.constant 8 : i32
    %0 = arith.muli %arg1, %c8_i32 : i32
    %c8_i32_0 = arith.constant 8 : i32
    %1 = arith.addi %0, %c8_i32_0 : i32
    %c8_i32_1 = arith.constant 8 : i32
    %2 = arith.minsi %1, %c8_i32_1 : i32
    %c0_i32 = arith.constant 0 : i32
    %c0_i32_2 = arith.constant 0 : i32
    %c0_i32_3 = arith.constant 0 : i32
    %c0_i32_4 = arith.constant 0 : i32
    return %arg0, %2, %c0_i32, %c0_i32_2, %c0_i32_3 : i32, i32, i32, i32, i32
  }
  func.func @transform_2(%arg0: i32, %arg1: i32) -> (i32, i32, i32) {
    %c0_i32 = arith.constant 0 : i32
    %c0_i32_0 = arith.constant 0 : i32
    %c0_i32_1 = arith.constant 0 : i32
    %c0_i32_2 = arith.constant 0 : i32
    return %c0_i32, %c0_i32_0, %c0_i32_1 : i32, i32, i32
  }
  func.func @transform_3(%arg0: i32, %arg1: i32) -> (i32, i32, i32) {
    %c0_i32 = arith.constant 0 : i32
    %c0_i32_0 = arith.constant 0 : i32
    %c0_i32_1 = arith.constant 0 : i32
    %c0_i32_2 = arith.constant 0 : i32
    return %c0_i32, %c0_i32_0, %c0_i32_1 : i32, i32, i32
  }
  func.func @transform_4(%arg0: i32, %arg1: i32) -> (i32, i32) {
    %c0_i32 = arith.constant 0 : i32
    %c0_i32_0 = arith.constant 0 : i32
    %c0_i32_1 = arith.constant 0 : i32
    return %c0_i32, %c0_i32_0 : i32, i32
  }
  func.func @transform_5(%arg0: i32, %arg1: i32) -> (i32, i32, i32, i32) {
    %c0_i32 = arith.constant 0 : i32
    %c0_i32_0 = arith.constant 0 : i32
    %c0_i32_1 = arith.constant 0 : i32
    return %arg0, %arg1, %c0_i32, %c0_i32_0 : i32, i32, i32, i32
  }
}

</mosaic_0001>

<bundles_post_ra>
// kernel: tpu_custom_call.1
= control target key start
LH: loop header
LB: loop body
LE: loop exit
PB: predicated region body
PF: predicated region fallthrough
CT: control target
= control target key end

     0   :  { %s1638_s18 = smov 0   ;;  %s1640_s19 = smov 0   ;;  %s1905_s0 = inlined_call_operand.vmem [shape: f32[2,9,2,9,8], index: 0, kind: input, shape index: {}]   ;;  %s1906_s1 = inlined_call_operand.vmem [shape: f32[2,9,2,9,8], index: 1, kind: input, shape index: {}]   ;;  %s1907_s2 = inlined_call_operand.vmem [shape: f32[3,8,4], index: 2, kind: input, shape index: {}]   ;;  %s1908_s3 = inlined_call_operand.vmem [shape: f32[3,4,4], index: 3, kind: input, shape index: {}]   ;;  %s1909_s4 = inlined_call_operand.vmem [shape: f32[1,4], index: 4, kind: input, shape index: {}]   ;;  %s1910_s5 = inlined_call_operand.vmem [shape: f32[2,8,8,4], index: 5, kind: output, shape index: {}]  }
   0x1   :  { %s1642_s20 = smov 0  }
   0x2 LB: > { %s27_s21 = sadd.s32 1, %s1602_s19  ;;  %p1353_p0 = scmp.ge.s32.totalorder %s1606_s20, 1  ;;  %s1606_s20 = sphi %s1642_s20, %s15_s20   ;;  %s1602_s19 = sphi %s1640_s19, %s1912_s19   ;;  %s1598_s18 = sphi %s1638_s18, %s1911_s18  }
   0x3   : > { %p29_p1 = scmp.ge.s32.totalorder %s27_s21, 2  ;;  %p253_p2 = scmp.lt.s32.totalorder %s1606_s20, 3 }
   0x5   : > { %s1914_s21 = smov (%p29_p1, %s27_s21), 0  ;;  %p254_p3 = pnand %p1353_p0, %p253_p2 }
   0x6   : > { %p316_p4 = scmp.lt.s32.totalorder (!%p254_p3), %s1598_s18, 1 }
   0x7   : > { %257 = sbr.rel (%p254_p3) target bundleno = 267 (0x10b), region = 40 }
   0xc   : > { %v393_v0 = vld [vmem:[%s1907_s2] sm:$0xff]  ;;  %vm453_vm0 = vcmask 1043456   ;;  %v1375_v3 = vld [vmem:[%s1907_s2 + $0x8] sm:$0xff]  ;;  %s1916_s18 = smov (!%p316_p4, %s1598_s18), 1  ;;  %vm562_vm1 = vcmask 64512   ;;  %v1684_v4 = vld [vmem:[%s1907_s2 + $0x10] sm:$0xff] }
   0xd   : > { %v435_v1 = vld [vmem:[%s1908_s3] sm:$0xf]  ;;  %1487 = vmatprep.subr.mxu1 %v393_v0  ;;  %v1376_v2 = vld [vmem:[%s1908_s3 + $0x4] sm:$0xf]  ;;  %s1557_s30 = smul.u32 288, %s1916_s18  ;;  %vm410_vm2 = vcmask 1046528  }
   0xe   : > { %1473 = vmatprep.subr.msk.mxu0 %vm453_vm0, %v435_v1  ;;  %1488 = vmatpush3.msra.mxu1 %v393_v0  ;;  %vm436_vm3 = vcmask 31744   ;;  %v1395_v32 = vld [vmem:[%s1908_s3 + $0x8] sm:$0xf]  ;;  %s1418_s17 = sshll.u32 %s1916_s18, 6 }
   0xf   : > { %1474 = vmatpush3.msk.msra.mxu0 %vm453_vm0, %v435_v1  ;;  %1515 = vmatprep.subr.mxu1 %v1375_v3  ;;  %s1679_s8 = scalar_lea.vmem %s1905_s0, %s1557_s30  ;;  %s1417_s13 = sadd.s32 256, %s1557_s30 }
  0x10   : > { %1501 = vmatprep.subr.msk.mxu0 %vm453_vm0, %v1376_v2  ;;  %v359_v5 = vld [vmem:[%s1679_s8] sm:$0xff]  ;;  %v360_v7 = vld [vmem:[%s1679_s8 + $0x8] sm:$0x1]  ;;  %v361_v41 = vld [vmem:[%s1679_s8 + $0x10] sm:$0xff]  ;;  %s344_s16 = scalar_lea.vmem %s1906_s1, %s1417_s13  ;;  %s1874_s26 = scalar_lea.vmem %s1910_s5, %s1418_s17 }
  0x11   : > { %v1688_v6 = vld [vmem:[%s1679_s8 + $0x20] sm:$0xff]  ;;  %v411_v8 = vrot.slane %v359_v5, 1  ;;  %1489 = vmatprep.mubr.msk.f32.mxu1 %vm562_vm1, %v359_v5  ;;  %v412_v10 = vrot.slane %v360_v7, 1  ;;  %v364_v11 = vld [vmem:[%s1679_s8 + $0x28] sm:$0x1]  ;;  %v702_v47 = vrot.slane %v361_v41, 1 }
  0x12   : > { %v414_v9 = vrot.slane %v1688_v6, 1  ;;  %v1695_v12 = vld [vmem:[%s1679_s8 + $0x40] sm:$0xff]  ;;  %1490 = vmatmul.mubr.msk.f32.vlgmr.msra.gmra.mxu1 %vm562_vm1, %v1688_v6  ;;  %v415_v13 = vrot.slane %v364_v11, 1  ;;  %v368_v16 = vld [vmem:[%s1679_s8 + $0x48] sm:$0x1]  ;;  %v365_v48 = vld [vmem:[%s1679_s8 + $0x30] sm:$0xff] }
  0x13   : > { %v417_v14 = vrot.slane %v1695_v12, 1  ;;  %v1701_v15 = vld [vmem:[%s1679_s8 + $0x60] sm:$0xff]  ;;  %v413_v18 = vsel %vm410_vm2, %v411_v8, %v412_v10  ;;  %1516 = vmatpush3.msra.mxu1 %v1375_v3  ;;  %1492 = vmatprep.mubr.msk.f32.mxu1 %vm562_vm1, %v1695_v12  ;;  %v418_v20 = vrot.slane %v368_v16, 1  ;;  %v372_v21 = vld [vmem:[%s1679_s8 + $0x68] sm:$0x1]  ;;  %v369_v51 = vld [vmem:[%s1679_s8 + $0x50] sm:$0xff] }
  0x14   : > { %v1705_v17 = vld [vmem:[%s1679_s8 + $0x80] sm:$0xff]  ;;  %v420_v19 = vrot.slane %v1701_v15, 1  ;;  %1475 = vmatprep.mubr.msk.f32.mxu0 %vm436_vm3, %v413_v18  ;;  %v1718_v24 = vsel %vm410_vm2, %v414_v9, %v415_v13  ;;  %v421_v25 = vrot.slane %v372_v21, 1  ;;  %v376_v26 = vld [vmem:[%s1679_s8 + $0x88] sm:$0x1]  ;;  %1543 = vmatprep.subr.mxu1 %v1684_v4  ;;  %v705_v54 = vrot.slane %v365_v48, 1 }
  0x15   : > { %v423_v22 = vrot.slane %v1705_v17, 1  ;;  %v1714_v23 = vld [vmem:[%s1679_s8 + $0xa0] sm:$0xff]  ;;  %v380_v27 = vld [vmem:[%s1679_s8 + $0xa8] sm:$0x1]  ;;  %1476 = vmatmul.mubr.msk.f32.vlgmr.msra.gmra.mxu0 %vm436_vm3, %v1718_v24  ;;  %v1726_v28 = vsel %vm410_vm2, %v417_v14, %v418_v20  ;;  %v424_v29 = vrot.slane %v376_v26, 1  ;;  %v373_v57 = vld [vmem:[%s1679_s8 + $0x70] sm:$0xff] }
  0x16   : > { %v1729_v30 = vld [vmem:[%s1679_s8 + $0xc0] sm:$0xff]  ;;  %v384_v31 = vld [vmem:[%s1679_s8 + $0xc8] sm:$0x1]  ;;  %1502 = vmatpush3.msk.msra.mxu0 %vm453_vm0, %v1376_v2  ;;  %1493 = vmatmul.mubr.msk.f32.gmra.mxu1 %vm562_vm1, %v1701_v15  ;;  %v1739_v33 = vsel %vm410_vm2, %v420_v19, %v421_v25  ;;  %v426_v34 = vrot.slane %v1714_v23, 1  ;;  %v427_v35 = vrot.slane %v380_v27, 1  ;;  %v708_v59 = vrot.slane %v369_v51, 1 }
  0x17   : > { %1478 = vmatprep.mubr.msk.f32.mxu0 %vm436_vm3, %v1726_v28  ;;  %1495 = vmatprep.mubr.msk.f32.mxu1 %vm562_vm1, %v1705_v17  ;;  %v1747_v36 = vsel %vm410_vm2, %v423_v22, %v424_v29  ;;  %v429_v37 = vrot.slane %v1729_v30, 1  ;;  %v1751_v38 = vld [vmem:[%s1679_s8 + $0xe0] sm:$0xff]  ;;  %v430_v39 = vrot.slane %v384_v31, 1  ;;  %v388_v40 = vld [vmem:[%s1679_s8 + $0xe8] sm:$0x1]  ;;  %v377_v61 = vld [vmem:[%s1679_s8 + $0x90] sm:$0xff] }
  0x18   : > { %v362_v42 = vld [vmem:[%s1679_s8 + $0x18] sm:$0x1]  ;;  %1529 = vmatprep.subr.msk.mxu0 %vm453_vm0, %v1395_v32  ;;  %v1764_v43 = vsel %vm410_vm2, %v426_v34, %v427_v35  ;;  %v432_v44 = vrot.slane %v1751_v38, 1  ;;  %v433_v45 = vrot.slane %v388_v40, 1  ;;  %v711_v0 = vrot.slane %v373_v57, 1  ;;  %v381_v3 = vld [vmem:[%s1679_s8 + $0xb0] sm:$0xff] }
  0x19   : > { %1479 = vmatmul.mubr.msk.f32.gmra.mxu0 %vm436_vm3, %v1739_v33  ;;  %v1770_v46 = vsel %vm410_vm2, %v429_v37, %v430_v39  ;;  %v703_v49 = vrot.slane %v362_v42, 1  ;;  %v366_v50 = vld [vmem:[%s1679_s8 + $0x38] sm:$0x1]  ;;  %v714_v2 = vrot.slane %v377_v61, 1  ;;  %v385_v9 = vld [vmem:[%s1679_s8 + $0xd0] sm:$0xff]  ;;  %v717_v11 = vrot.slane %v381_v3, 1 }
  0x1a   : > { %1496 = vmatmul.mubr.msk.f32.gmra.mxu1 %vm562_vm1, %v1714_v23  ;;  %1481 = vmatprep.mubr.msk.f32.mxu0 %vm436_vm3, %v1747_v36  ;;  %v370_v52 = vld [vmem:[%s1679_s8 + $0x58] sm:$0x1]  ;;  %v1783_v53 = vsel %vm410_vm2, %v432_v44, %v433_v45  ;;  %v706_v55 = vrot.slane %v366_v50, 1  ;;  %v720_v16 = vrot.slane %v385_v9, 1  ;;  %v389_v18 = vld [vmem:[%s1679_s8 + $0xf0] sm:$0xff] }
  0x1b   : > { %1498 = vmatprep.mubr.msk.f32.mxu1 %vm562_vm1, %v1729_v30  ;;  %v704_v56 = vsel %vm410_vm2, %v702_v47, %v703_v49  ;;  %v374_v58 = vld [vmem:[%s1679_s8 + $0x78] sm:$0x1]  ;;  %v709_v60 = vrot.slane %v370_v52, 1  ;;  %v723_v22 = vrot.slane %v389_v18, 1 }
  0x1c   : > { %v378_v62 = vld [vmem:[%s1679_s8 + $0x98] sm:$0x1]  ;;  %v707_v63 = vsel %vm410_vm2, %v705_v54, %v706_v55  ;;  %v712_v1 = vrot.slane %v374_v58, 1 }
  0x1d   : > { %1482 = vmatmul.mubr.msk.f32.gmra.mxu0 %vm436_vm3, %v1764_v43  ;;  %v715_v5 = vrot.slane %v378_v62, 1  ;;  %v382_v7 = vld [vmem:[%s1679_s8 + $0xb8] sm:$0x1]  ;;  %v710_v8 = vsel %vm410_vm2, %v708_v59, %v709_v60 }
  0x1e   : > { %1499 = vmatmul.mubr.msk.f32.gmra.mxu1 %vm562_vm1, %v1751_v38  ;;  %1484 = vmatprep.mubr.msk.f32.mxu0 %vm436_vm3, %v1770_v46  ;;  %v386_v10 = vld [vmem:[%s1679_s8 + $0xd8] sm:$0x1]  ;;  %v718_v13 = vrot.slane %v382_v7, 1 }
  0x1f   : > { %1517 = vmatprep.mubr.msk.f32.mxu1 %vm562_vm1, %v361_v41  ;;  %v716_v14 = vsel %vm410_vm2, %v714_v2, %v715_v5  ;;  %v721_v19 = vrot.slane %v386_v10, 1  ;;  %v390_v20 = vld [vmem:[%s1679_s8 + $0xf8] sm:$0x1] }
  0x20   : > { %v719_v21 = vsel %vm410_vm2, %v717_v11, %v718_v13  ;;  %v724_v25 = vrot.slane %v390_v20, 1 }
  0x21   : > { %1485 = vmatmul.mubr.msk.f32.gmra.mxu0 %vm436_vm3, %v1783_v53  ;;  %v722_v26 = vsel %vm410_vm2, %v720_v16, %v721_v19 }
  0x22   : > { %1518 = vmatmul.mubr.msk.f32.vlgmr.msra.gmra.mxu1 %vm562_vm1, %v365_v48  ;;  %1503 = vmatprep.mubr.msk.f32.mxu0 %vm436_vm3, %v704_v56  ;;  %v725_v27 = vsel %vm410_vm2, %v723_v22, %v724_v25 }
  0x23   : > { %1544 = vmatpush3.msra.mxu1 %v1684_v4  ;;  %1520 = vmatprep.mubr.msk.f32.mxu1 %vm562_vm1, %v369_v51  ;;  %v713_v4 = vsel %vm410_vm2, %v711_v0, %v712_v1 }
  0x25   : > { %1504 = vmatmul.mubr.msk.f32.vlgmr.msra.gmra.mxu0 %vm436_vm3, %v707_v63 }
  0x26   : > { %1530 = vmatpush3.msk.msra.mxu0 %vm453_vm0, %v1395_v32  ;;  %1521 = vmatmul.mubr.msk.f32.gmra.mxu1 %vm562_vm1, %v373_v57 }
  0x27   : > { %1506 = vmatprep.mubr.msk.f32.mxu0 %vm436_vm3, %v710_v8  ;;  %1523 = vmatprep.mubr.msk.f32.mxu1 %vm562_vm1, %v377_v61 }
  0x29   : > { %1507 = vmatmul.mubr.msk.f32.gmra.mxu0 %vm436_vm3, %v713_v4 }
  0x2a   : > { %1524 = vmatmul.mubr.msk.f32.gmra.mxu1 %vm562_vm1, %v381_v3  ;;  %1509 = vmatprep.mubr.msk.f32.mxu0 %vm436_vm3, %v716_v14 }
  0x2b   : > { %1526 = vmatprep.mubr.msk.f32.mxu1 %vm562_vm1, %v385_v9  ;;  %v1413_v9 = vld [vmem:[%s1909_s4] ss:$0 sm:$0xff] }
  0x2d   : > { %1510 = vmatmul.mubr.msk.f32.gmra.mxu0 %vm436_vm3, %v719_v21 }
  0x2e   : > { %1527 = vmatmul.mubr.msk.f32.gmra.mxu1 %vm562_vm1, %v389_v18  ;;  %1512 = vmatprep.mubr.msk.f32.mxu0 %vm436_vm3, %v722_v26 }
  0x2f   : > { %1545 = vmatprep.mubr.msk.f32.mxu1 %vm562_vm1, %v1688_v6  ;;  %v391_v6 = vld [vmem:[%s344_s16] sm:$0xff] }
  0x31   : > { %1513 = vmatmul.mubr.msk.f32.gmra.mxu0 %vm436_vm3, %v725_v27 }
  0x32   : > { %1546 = vmatmul.mubr.msk.f32.vlgmr.msra.gmra.mxu1 %vm562_vm1, %v1695_v12  ;;  %1531 = vmatprep.mubr.msk.f32.mxu0 %vm436_vm3, %v1718_v24  ;;  %v392_v12 = vld [vmem:[%s344_s16 + $0x8] sm:$0x1] }
  0x33   : > { %1548 = vmatprep.mubr.msk.f32.mxu1 %vm562_vm1, %v1701_v15  ;;  %v985_v15 = vrot.slane %v391_v6, 1  ;;  %v986_v24 = vrot.slane %v392_v12, 1 }
  0x35   : > { %1532 = vmatmul.mubr.msk.f32.vlgmr.msra.gmra.mxu0 %vm436_vm3, %v1726_v28 }
  0x36   : > { %1549 = vmatmul.mubr.msk.f32.gmra.mxu1 %vm562_vm1, %v1705_v17  ;;  %1534 = vmatprep.mubr.msk.f32.mxu0 %vm436_vm3, %v1739_v33  ;;  %v987_v17 = vsel %vm410_vm2, %v985_v15, %v986_v24 }
  0x37   : > { %1551 = vmatprep.mubr.msk.f32.mxu1 %vm562_vm1, %v1714_v23 }
  0x39   : > { %1535 = vmatmul.mubr.msk.f32.gmra.mxu0 %vm436_vm3, %v1747_v36 }
  0x3a   : > { %1552 = vmatmul.mubr.msk.f32.gmra.mxu1 %vm562_vm1, %v1729_v30  ;;  %1537 = vmatprep.mubr.msk.f32.mxu0 %vm436_vm3, %v1764_v43 }
  0x3b   : > { %1554 = vmatprep.mubr.msk.f32.mxu1 %vm562_vm1, %v1751_v38 }
  0x3d   : > { %1538 = vmatmul.mubr.msk.f32.gmra.mxu0 %vm436_vm3, %v1770_v46 }
  0x3e   : > { %1555 = vmatmul.mubr.msk.f32.gmra.mxu1 %vm562_vm1, %v391_v6  ;;  %1540 = vmatprep.mubr.msk.f32.mxu0 %vm436_vm3, %v1783_v53 }
  0x41   : > { %1541 = vmatmul.mubr.msk.f32.gmra.mxu0 %vm436_vm3, %v987_v17 }
  0xd2   : > { %v1491_v23 = vpop.f32.mrf.mxu1 }
  0xd4   : > { %v645_v28 = vpop.f32.mrf.mxu1 }
  0xd5   : > { %v1477_v29 = vpop.f32.mrf.mxu0 }
  0xd6   : > { %v1494_v30 = vpop.f32.mrf.mxu1  ;;  %v651_v61 = vadd.f32 %v1491_v23, %v1477_v29 }
  0xd7   : > { %v523_v31 = vpop.f32.mrf.mxu0 }
  0xd8   : > { %v655_v32 = vpop.f32.mrf.mxu1  ;;  %v646_v1 = vadd.f32 %v645_v28, %v523_v31 }
  0xd9   : > { %v1480_v33 = vpop.f32.mrf.mxu0 }
  0xda   : > { %v1497_v34 = vpop.f32.mrf.mxu1  ;;  %v661_v8 = vadd.f32 %v1494_v30, %v1480_v33 }
  0xdb   : > { %v533_v35 = vpop.f32.mrf.mxu0 }
  0xdc   : > { %v665_v36 = vpop.f32.mrf.mxu1  ;;  %v656_v18 = vadd.f32 %v655_v32, %v533_v35 }
  0xdd   : > { %v1483_v37 = vpop.f32.mrf.mxu0 }
  0xde   : > { %v1859_v38 = vpop.f32.mrf.mxu1  ;;  %v671_v6 = vadd.f32 %v1497_v34, %v1483_v37 }
  0xdf   : > { %v543_v39 = vpop.f32.mrf.mxu0 }
  0xe0   : > { %v1861_v40 = vpop.f32.mrf.mxu1  ;;  %v666_v30 = vadd.f32 %v665_v36, %v543_v39 }
  0xe1   : > { %v1863_v41 = vpop.f32.mrf.mxu0 }
  0xe2   : > { %v1519_v42 = vpop.f32.mrf.mxu1  ;;  %v681_v37 = vadd.f32 %v1859_v38, %v1863_v41 }
  0xe3   : > { %v1865_v43 = vpop.f32.mrf.mxu0 }
  0xe4   : > { %v934_v44 = vpop.f32.mrf.mxu1 }
  0xe5   : > { %v1505_v45 = vpop.f32.mrf.mxu0 }
  0xe6   : > { %v1522_v46 = vpop.f32.mrf.mxu1  ;;  %v940_v58 = vadd.f32 %v1519_v42, %v1505_v45 }
  0xe7   : > { %v813_v47 = vpop.f32.mrf.mxu0 }
  0xe8   : > { %v944_v48 = vpop.f32.mrf.mxu1  ;;  %v935_v62 = vadd.f32 %v934_v44, %v813_v47  ;;  %v974_v2 = vadd.f32 %v940_v58, %v651_v61 }
  0xe9   : > { %v1508_v49 = vpop.f32.mrf.mxu0 }
  0xea   : > { %v1525_v50 = vpop.f32.mrf.mxu1  ;;  %v950_v3 = vadd.f32 %v1522_v46, %v1508_v49  ;;  %v973_v4 = vadd.f32 %v935_v62, %v646_v1  ;;  %v676_v49 = vadd.f32 %v1861_v40, %v1865_v43 }
  0xeb   : > { %v823_v51 = vpop.f32.mrf.mxu0 }
  0xec   : > { %v954_v52 = vpop.f32.mrf.mxu1  ;;  %v945_v11 = vadd.f32 %v944_v48, %v823_v51  ;;  %v976_v21 = vadd.f32 %v950_v3, %v661_v8 }
  0xed   : > { %v1511_v53 = vpop.f32.mrf.mxu0 }
  0xee   : > { %v1528_v54 = vpop.f32.mrf.mxu1  ;;  %v960_v19 = vadd.f32 %v1525_v50, %v1511_v53  ;;  %v975_v24 = vadd.f32 %v945_v11, %v656_v18 }
  0xef   : > { %v833_v55 = vpop.f32.mrf.mxu0 }
  0xf0   : > { %v964_v56 = vpop.f32.mrf.mxu1  ;;  %v955_v12 = vadd.f32 %v954_v52, %v833_v55  ;;  %v978_v31 = vadd.f32 %v960_v19, %v671_v6 }
  0xf1   : > { %v1514_v57 = vpop.f32.mrf.mxu0 }
  0xf2   : > { %v1547_v59 = vpop.f32.mrf.mxu1  ;;  %v970_v33 = vadd.f32 %v1528_v54, %v1514_v57  ;;  %v977_v44 = vadd.f32 %v955_v12, %v666_v30 }
  0xf3   : > { %v843_v60 = vpop.f32.mrf.mxu0 }
  0xf4   : > { %v1168_v63 = vpop.f32.mrf.mxu1  ;;  %v965_v47 = vadd.f32 %v964_v56, %v843_v60  ;;  %v980_v51 = vadd.f32 %v970_v33, %v681_v37 }
  0xf5   : > { %v1533_v0 = vpop.f32.mrf.mxu0 }
  0xf6   : > { %v1174_v5 = vadd.f32 %v1547_v59, %v1533_v0  ;;  %v1550_v7 = vpop.f32.mrf.mxu1  ;;  %v979_v55 = vadd.f32 %v965_v47, %v676_v49 }
  0xf7   : > { %v1061_v10 = vpop.f32.mrf.mxu0 }
  0xf8   : > { %v1208_v13 = vadd.f32 %v1174_v5, %v974_v2  ;;  %v1169_v14 = vadd.f32 %v1168_v63, %v1061_v10  ;;  %v1178_v16 = vpop.f32.mrf.mxu1 }
  0xf9   : > { %v1536_v20 = vpop.f32.mrf.mxu0 }
  0xfa   : > { %v1223_v22 = vadd.f32 %v1413_v9, %v1208_v13  ;;  %v1207_v25 = vadd.f32 %v1169_v14, %v973_v4  ;;  %v1184_v26 = vadd.f32 %v1550_v7, %v1536_v20  ;;  %v1553_v27 = vpop.f32.mrf.mxu1 }
  0xfb   : > { %v1071_v15 = vpop.f32.mrf.mxu0 }
  0xfc   : > { %1231 = vst.msk [vmem:[%s1874_s26 + $0x8] sm:$0xff] %vm436_vm3, %v1223_v22  ;;  %v1222_v17 = vadd.f32 %v1413_v9, %v1207_v25  ;;  %v1210_v23 = vadd.f32 %v1184_v26, %v976_v21  ;;  %v1179_v28 = vadd.f32 %v1178_v16, %v1071_v15  ;;  %v1188_v29 = vpop.f32.mrf.mxu1 }
  0xfd   : > { %v1539_v32 = vpop.f32.mrf.mxu0 }
  0xfe   : > { %1230 = vst.msk [vmem:[%s1874_s26] sm:$0xff] %vm436_vm3, %v1222_v17  ;;  %v1225_v35 = vadd.f32 %v1413_v9, %v1210_v23  ;;  %v1209_v42 = vadd.f32 %v1179_v28, %v975_v24  ;;  %v1194_v34 = vadd.f32 %v1553_v27, %v1539_v32  ;;  %v1556_v46 = vpop.f32.mrf.mxu1 }
  0xff   : > { %v1081_v45 = vpop.f32.mrf.mxu0 }
 0x100   : > { %1233 = vst.msk [vmem:[%s1874_s26 + $0x18] sm:$0xff] %vm436_vm3, %v1225_v35  ;;  %v1224_v36 = vadd.f32 %v1413_v9, %v1209_v42  ;;  %v1212_v39 = vadd.f32 %v1194_v34, %v978_v31  ;;  %v1189_v48 = vadd.f32 %v1188_v29, %v1081_v45  ;;  %v1198_v53 = vpop.f32.mrf.mxu1 }
 0x101   : > { %v1542_v50 = vpop.f32.mrf.mxu0 }
 0x102   : > { %1232 = vst.msk [vmem:[%s1874_s26 + $0x10] sm:$0xff] %vm436_vm3, %v1224_v36  ;;  %v1227_v38 = vadd.f32 %v1413_v9, %v1212_v39  ;;  %v1211_v41 = vadd.f32 %v1189_v48, %v977_v44  ;;  %v1204_v52 = vadd.f32 %v1556_v46, %v1542_v50 }
 0x103   : > { %v1091_v54 = vpop.f32.mrf.mxu0 }
 0x104   : > { %1235 = vst.msk [vmem:[%s1874_s26 + $0x28] sm:$0xff] %vm436_vm3, %v1227_v38  ;;  %v1226_v56 = vadd.f32 %v1413_v9, %v1211_v41  ;;  %v1214_v57 = vadd.f32 %v1204_v52, %v980_v51  ;;  %v1199_v58 = vadd.f32 %v1198_v53, %v1091_v54 }
 0x106   : > { %1234 = vst.msk [vmem:[%s1874_s26 + $0x20] sm:$0xff] %vm436_vm3, %v1226_v56  ;;  %v1229_v40 = vadd.f32 %v1413_v9, %v1214_v57  ;;  %v1213_v43 = vadd.f32 %v1199_v58, %v979_v55 }
 0x108   : > { %1237 = vst.msk [vmem:[%s1874_s26 + $0x38] sm:$0xff] %vm436_vm3, %v1229_v40  ;;  %v1228_v59 = vadd.f32 %v1413_v9, %v1213_v43 }
 0x10a   : > { %1236 = vst.msk [vmem:[%s1874_s26 + $0x30] sm:$0xff] %vm436_vm3, %v1228_v59 }
 0x10b PF: > { %s15_s20 = sadd.s32 1, %s1606_s20   ;;  %s1911_s18 = smov %s1602_s19 }
 0x10c   : > { %p12_p5 = scmp.ge.s32.totalorder %s15_s20, 4   ;;  %s1912_s19 = smov %s1914_s21 }
 0x10e   :  { %14 = sbr.rel (!%p12_p5) target bundleno = 2 (0x2), region = 77 }

</bundles_post_ra>
